<compile_context>
chip_gen: v7x
topology: tpu7x:2x2x1
jax: 0.10.0
libtpu: 0.0.40
codegen_flags: <defaults>
</compile_context>

<pallas_src>
import jax
import jax.numpy as jnp
from jax.experimental import pallas as pl
from jax.experimental.pallas import tpu as pltpu


def _deconv_kernel(x_ref, w_ref, b_ref, o_ref):
    # x_ref: (1, Cin, T)   w_ref: (4*Cout, Cin)   b_ref: (4*Cout, 1)
    # o_ref: (1, 4*Cout, T)
    acc = jnp.dot(w_ref[...], x_ref[0], preferred_element_type=jnp.float32)
    o_ref[0] = (acc + b_ref[...]).astype(o_ref.dtype)


def _pick_hw_tile(hw, cin, cout4, itemsize, max_tile_bytes):
    """Largest multiple of 128 that divides `hw` while keeping the
    double-buffered x/out tiles under `max_tile_bytes`."""
    if hw % 128 != 0:
        return hw  # full extent per image; still pipelined across the batch axis
    per_col = 2 * (cin + cout4) * itemsize      # 2x = double buffering of in+out
    cap = max(128, (max_tile_bytes // per_col) // 128 * 128)
    t = min(hw, cap)
    while hw % t != 0:
        t -= 128
    return t


def single_deconv2d_block(x, weight, bias, *, compute_dtype=None,
                          max_tile_bytes=12 * 1024 * 1024):
    """ConvTranspose2d(kernel_size=2, stride=2, padding=0) forward.

    x:      (N, Cin, H, W)     NCHW (PyTorch convention)
    weight: (Cin, Cout, 2, 2)  PyTorch ConvTranspose2d weight layout
    bias:   (Cout,)
    returns (N, Cout, 2H, 2W)
    """
    N, Cin, H, W = x.shape
    Cout = weight.shape[1]
    HW = H * W
    C4 = 4 * Cout

    # ---- glue in (free reshape of NCHW + tiny weight repack) -------------
    x_r = x.reshape(N, Cin, HW)                                   # (n, ci, i*W+j)
    w_mat = jnp.transpose(weight, (1, 2, 3, 0)).reshape(C4, Cin)  # rows = (co, ki, kj)
    b_mat = jnp.repeat(bias, 4).reshape(C4, 1).astype(jnp.float32)

    if compute_dtype is not None:  # optional bf16 path: halves HBM bytes (mem-bound op)
        x_r = x_r.astype(compute_dtype)
        w_mat = w_mat.astype(compute_dtype)

    itemsize = jnp.dtype(x_r.dtype).itemsize
    t_hw = _pick_hw_tile(HW, Cin, C4, itemsize, max_tile_bytes)
    grid = (N, HW // t_hw)

    flops = 2 * N * HW * Cin * C4
    bytes_accessed = (x_r.size * itemsize + w_mat.size * itemsize +
                      b_mat.size * 4 + N * C4 * HW * jnp.dtype(x.dtype).itemsize)

    y_t = pl.pallas_call(
        _deconv_kernel,
        out_shape=jax.ShapeDtypeStruct((N, C4, HW), x.dtype),
        grid_spec=pltpu.PrefetchScalarGridSpec(
            num_scalar_prefetch=0,
            grid=grid,
            in_specs=[
                pl.BlockSpec((1, Cin, t_hw), lambda n, c: (n, 0, c)),
                # Constant-index blocks: DMA'd once, reused across the grid.
                pl.BlockSpec((C4, Cin), lambda n, c: (0, 0)),
                pl.BlockSpec((C4, 1), lambda n, c: (0, 0)),
            ],
            out_specs=pl.BlockSpec((1, C4, t_hw), lambda n, c: (n, 0, c)),
        ),
        compiler_params=pltpu.CompilerParams(
            dimension_semantics=("parallel", "parallel"),
            vmem_limit_bytes=64 * 1024 * 1024,
        ),
        cost_estimate=pl.CostEstimate(
            flops=flops, transcendentals=0, bytes_accessed=bytes_accessed),
    )(x_r, w_mat, b_mat)

    # ---- glue out: interleave the 2x2 sub-pixels into the upsampled grid ---
    # TODO(synk): could be fused into the kernel with stride-2 VMEM stores; kept
    # in XLA for lowering robustness (single transpose over the output).
    y = y_t.reshape(N, Cout, 2, 2, H, W)        # (n, co, ki, kj, i, j)
    y = jnp.transpose(y, (0, 1, 4, 2, 5, 3))    # (n, co, i, ki, j, kj)
    return y.reshape(N, Cout, 2 * H, 2 * W)     # NCHW


def _reference(x, weight, bias):
    # out[n, co, 2i+ki, 2j+kj] = sum_ci x[n,ci,i,j] * W[ci,co,ki,kj] + b[co]
    N, Cin, H, W = x.shape
    Cout = weight.shape[1]
    y = jnp.einsum("ncij,cokl->noikjl", x, weight)   # (n, co, i, ki, j, kj)
    y = y.reshape(N, Cout, 2 * H, 2 * W)
    return y + bias[None, :, None, None]


if __name__ == "__main__":
    key = jax.random.PRNGKey(0)
    k1, k2, k3 = jax.random.split(key, 3)

    N, Cin, Cout, H, W = 2, 4, 8, 16, 16
    x = jax.random.normal(k1, (N, Cin, H, W), dtype=jnp.float32)
    # Deterministic synthetic parameters (shapes per nn.ConvTranspose2d(Cin, Cout, 2, 2)).
    weight = jax.random.normal(k2, (Cin, Cout, 2, 2), dtype=jnp.float32) * 0.1
    bias = jax.random.normal(k3, (Cout,), dtype=jnp.float32) * 0.1

    out = jax.block_until_ready(single_deconv2d_block(x, weight, bias))
    ref = _reference(x, weight, bias)

    assert out.shape == (N, Cout, 2 * H, 2 * W)
    assert jnp.allclose(out, ref, atol=1e-5, rtol=1e-5)

    print("KERNEL_OK")
</pallas_src>

<mosaic_0001>
module attributes {stable_mosaic.version = 11 : i64} {
  func.func @_deconv_kernel(%arg0: i32, %arg1: i32, %arg2: memref<1x4x256xf32, #tpu.memory_space<vmem>>, %arg3: memref<32x4xf32, #tpu.memory_space<vmem>>, %arg4: memref<32x1xf32, #tpu.memory_space<vmem>>, %arg5: memref<1x32x256xf32, #tpu.memory_space<vmem>>) attributes {dimension_semantics = [#tpu.dimension_semantics<parallel>, #tpu.dimension_semantics<parallel>], iteration_bounds = array<i64: 2, 1>, scalar_prefetch = 0 : i64, scratch_operands = 0 : i64, tpu.core_type = #tpu.core_type<tc>, window_params = [{transform_indices = @transform_0, window_bounds = array<i64: 1, 4, 256>}, {pipeline_mode = #tpu.pipeline_mode<synchronous>, transform_indices = @transform_1, window_bounds = array<i64: 32, 4>}, {pipeline_mode = #tpu.pipeline_mode<synchronous>, transform_indices = @transform_2, window_bounds = array<i64: 32, 1>}, {transform_indices = @transform_3, window_bounds = array<i64: 1, 32, 256>}]} {
    %c0 = arith.constant 0 : index
    %c0_0 = arith.constant 0 : index
    %0 = vector.load %arg3[%c0, %c0_0] : memref<32x4xf32, #tpu.memory_space<vmem>>, vector<32x4xf32>
    %c0_1 = arith.constant 0 : index
    %c0_2 = arith.constant 0 : index
    %c0_3 = arith.constant 0 : index
    %1 = vector.load %arg2[%c0_1, %c0_2, %c0_3] : memref<1x4x256xf32, #tpu.memory_space<vmem>>, vector<1x4x256xf32>
    %2 = vector.shape_cast %1 : vector<1x4x256xf32> to vector<4x256xf32>
    %cst = arith.constant dense<0.000000e+00> : vector<32x256xf32>
    %3 = tpu.matmul %0, %2, %cst {dimension_numbers = #tpu.dot_dimension_numbers<[1], [0], [0], [1], [0, 0, 1, 1], [], []>} : vector<32x4xf32>, vector<4x256xf32>, vector<32x256xf32> -> vector<32x256xf32>
    %c0_4 = arith.constant 0 : index
    %c0_5 = arith.constant 0 : index
    %4 = vector.load %arg4[%c0_4, %c0_5] : memref<32x1xf32, #tpu.memory_space<vmem>>, vector<32x1xf32>
    %5 = vector.broadcast %4 : vector<32x1xf32> to vector<32x256xf32>
    %6 = arith.addf %3, %5 : vector<32x256xf32>
    %c0_6 = arith.constant 0 : index
    %c0_7 = arith.constant 0 : index
    %c0_8 = arith.constant 0 : index
    %7 = vector.load %arg5[%c0_6, %c0_7, %c0_8] : memref<1x32x256xf32, #tpu.memory_space<vmem>>, vector<1x32x256xf32>
    %8 = vector.shape_cast %7 : vector<1x32x256xf32> to vector<32x256xf32>
    %9 = vector.shape_cast %6 : vector<32x256xf32> to vector<1x32x256xf32>
    tpu.vector_store %arg5[%c0_6, %c0_7, %c0_8], %9 {strides = array<i32>} : memref<1x32x256xf32, #tpu.memory_space<vmem>>, vector<1x32x256xf32>,
    return
  }
  func.func @transform_0(%arg0: i32, %arg1: i32) -> (i32, i32, i32) {
    %c0_i32 = arith.constant 0 : i32
    %c0_i32_0 = arith.constant 0 : i32
    return %arg0, %c0_i32, %arg1 : i32, i32, i32
  }
  func.func @transform_1(%arg0: i32, %arg1: i32) -> (i32, i32) {
    %c0_i32 = arith.constant 0 : i32
    %c0_i32_0 = arith.constant 0 : i32
    %c0_i32_1 = arith.constant 0 : i32
    return %c0_i32, %c0_i32_0 : i32, i32
  }
  func.func @transform_2(%arg0: i32, %arg1: i32) -> (i32, i32) {
    %c0_i32 = arith.constant 0 : i32
    %c0_i32_0 = arith.constant 0 : i32
    %c0_i32_1 = arith.constant 0 : i32
    return %c0_i32, %c0_i32_0 : i32, i32
  }
  func.func @transform_3(%arg0: i32, %arg1: i32) -> (i32, i32, i32) {
    %c0_i32 = arith.constant 0 : i32
    %c0_i32_0 = arith.constant 0 : i32
    return %arg0, %c0_i32, %arg1 : i32, i32, i32
  }
}

</mosaic_0001>

<bundles_post_ra>
// kernel: tpu_custom_call.1
= control target key start
LH: loop header
LB: loop body
LE: loop exit
PB: predicated region body
PF: predicated region fallthrough
CT: control target
= control target key end

     0   :  { %8 = vsyncpa [#allocation3], 0  ;;  %s1086_s0 = inlined_call_operand.hbm [shape: f32[2,4,256], index: 0, kind: input, shape index: {}]   ;;  %s1087_s1 = inlined_call_operand.hbm [shape: f32[32,4], index: 1, kind: input, shape index: {}]   ;;  %s1088_s2 = inlined_call_operand.hbm [shape: f32[32,1], index: 2, kind: input, shape index: {}]   ;;  %s1089_s3 = inlined_call_operand.hbm [shape: f32[2,32,256], index: 3, kind: output, shape index: {}]  }
   0x1   :  { %10 = vsyncpa [#allocation3 + $0x1], 0 }
   0x2   :  { %11 = vsyncpa [#allocation6], 0 }
   0x3   :  { %12 = vsyncpa [#allocation4], 0 }
   0x4   :  { %14 = vsyncpa [#allocation4 + $0x1], 0  ;;  %s829_s12 = smov 0   ;;  %s831_s13 = smov 0  }
   0x5   :  { %s833_s14 = smov 0   ;;  %s835_s15 = smov 0  }
   0x6   :  { %s837_s16 = smov 0   ;;  %s839_s17 = smov 0  }
   0x7 LB: > { %s504_s18 = sadd.s32 4294967295, %s797_s17   ;;  %s505_s19 = sadd.s32 4294967294, %s797_s17   ;;  %s797_s17 = sphi %s839_s17, %s20_s17   ;;  %s793_s16 = sphi %s837_s16, %s1111_s16   ;;  %s789_s15 = sphi %s835_s15, %s1110_s15   ;;  %s785_s14 = sphi %s833_s14, %s1109_s14   ;;  %s781_s13 = sphi %s831_s13, %s1108_s13   ;;  %s777_s12 = sphi %s829_s12, %s1107_s12  }
   0x8   : > { %p54_p0 = scmp.ne.s32.totalorder %s781_s13, %s777_s12  ;;  %p863_p1 = scmp.eq.s32.totalorder %s504_s18, 0 }
   0x9   : > { %p867_p2 = scmp.eq.s32.totalorder %s504_s18, 1  ;;  %p128_p3 = scmp.eq.s32.totalorder %s505_s19, 1 }
   0xa   : > { %s1094_s20 = scalar_select %p863_p1, 1, 0 }
   0xb   : > { %p873_p4 = por %p863_p1, %p54_p0  ;;  %p506_p5 = scmp.ge.s32.totalorder %s797_s17, 1 }
   0xc   : > { %p878_p6 = por %p128_p3, %p54_p0  ;;  %p135_p7 = scmp.lt.s32.totalorder %s797_s17, 3 }
   0xd   : > { %s1096_s22 = scalar_select %p873_p4, 1, 0 }
   0xe   : > { %s1097_s23 = scalar_select %p878_p6, 1, 0 }
   0xf   : > { %p883_p8 = pnand %p506_p5, %p135_p7  ;;  %s799_s25 = smov [#allocation5]  }
  0x10   : > { %s147_s26 = sshll.u32 %s799_s25, 4  ;;  %s800_s28 = smov [#allocation7]   ;;  %s887_s26 = int_to_ptr.vmem [resolvable:$true] %s147_s26 }
  0x11   : > { %p545_p9 = pneg %p883_p8  ;;  %s160_s29 = sshll.u32 %s800_s28, 4  ;;  %s898_s29 = int_to_ptr.vmem [resolvable:$true] %s160_s29 }
  0x12   : > { %s625_s5 = scalar_lea.hbm %s1087_s1, 512 }
  0x13   : > { %p894_p11 = pnand %p545_p9, %p863_p1  ;;  %p626_p12 = scmp.ne.s32.totalorder %s1087_s1, %s625_s5 }
  0x14   : > { %p632_p5 = scmp.lt.u32.totalorder %s625_s5, %s1087_s1 }
  0x15   : > { %p627_p13 = pneg %p894_p11 }
  0x17   : > { %p628_p0 = pnand %p627_p13, %p626_p12 }
  0x19   : > { %p629_p3 = pneg %p628_p0 }
  0x1b   : > { %p634_p7 = pnand %p632_p5, %p629_p3 }
  0x1d   : > { %637 = shalt.err (!%p634_p7)
}
  0x1e   : > { %s638_s10 = scalar_lea.vmem %s887_s26, 512  ;;  %p646_p1 = scmp.lt.s32.totalorder %s887_s26, %s887_s26 }
  0x1f   : > { %p639_p9 = scmp.ne.s32.totalorder %s887_s26, %s638_s10  ;;  %p647_p12 = scmp.lt.s32.totalorder %s638_s10, %s638_s10 }
  0x21   : > { %p641_p10 = pnand %p639_p9, %p627_p13  ;;  %p648_p0 = por %p647_p12, %p646_p1 }
  0x23   : > { %p642_p6 = pneg %p641_p10 }
  0x25   : > { %p649_p4 = pnand %p648_p0, %p642_p6 }
  0x27   : > { %652 = shalt.err (!%p649_p4)
}
  0x28   : > { %s801_s11 = smov 128   ;;  %s802_s18 = smov 8  }
  0x29   : > { %548 = dma.hbm_to_vmem [thread:$0]  (!%p894_p11), %s1087_s1, 512, %s887_s26, [#allocation6], %s801_s11, %s801_s11, %s802_s18  }
  0x2a   : > { %s653_s4 = scalar_lea.hbm %s1088_s2, 512 }
  0x2b   : > { %p654_p1 = scmp.ne.s32.totalorder %s1088_s2, %s653_s4  ;;  %p660_p10 = scmp.lt.u32.totalorder %s653_s4, %s1088_s2 }
  0x2d   : > { %p656_p4 = pnand %p654_p1, %p627_p13 }
  0x2f   : > { %p657_p6 = pneg %p656_p4 }
  0x31   : > { %p662_p3 = pnand %p660_p10, %p657_p6 }
  0x33   : > { %665 = shalt.err (!%p662_p3)
}
  0x34   : > { %s666_s26 = scalar_lea.vmem %s898_s29, 512  ;;  %p674_p12 = scmp.lt.s32.totalorder %s898_s29, %s898_s29 }
  0x35   : > { %p667_p5 = scmp.ne.s32.totalorder %s898_s29, %s666_s26  ;;  %p675_p0 = scmp.lt.s32.totalorder %s666_s26, %s666_s26 }
  0x37   : > { %p669_p7 = pnand %p667_p5, %p627_p13  ;;  %p676_p1 = por %p675_p0, %p674_p12 }
  0x39   : > { %p670_p9 = pneg %p669_p7 }
  0x3b   : > { %p677_p4 = pnand %p676_p1, %p670_p9 }
  0x3d   : > { %680 = shalt.err (!%p677_p4)
}
  0x3e   : > { %551 = dma.hbm_to_vmem [thread:$0]  (!%p894_p11), %s1088_s2, 512, %s898_s29, [#allocation6], %s801_s11, %s801_s11, %s802_s18  }
  0x3f   : > { %s32_s19 = sadd.s32 1, %s793_s16  ;;  %s41_s25 = sadd.s32 1, %s785_s14 }
  0x40   : > { %p34_p13 = scmp.ge.s32.totalorder %s32_s19, 2  ;;  %p48_p6 = scmp.ne.s32.totalorder %s785_s14, %s781_s13 }
  0x41   : > { %p49_p10 = scmp.eq.s32.totalorder %s797_s17, 0  ;;  %p562_p3 = scmp.lt.s32.totalorder %s797_s17, 2 }
  0x42   : > { %s1113_s19 = smov (%p34_p13, %s32_s19), 0  ;;  %p962_p7 = por %p867_p2, %p48_p6 }
  0x43   : > { %p50_p5 = por %p49_p10, %p48_p6  ;;  %s36_s28 = ssub.s32 %s793_s16, %s1113_s19 }
  0x44   : > { %s1100_s27 = scalar_select %p962_p7, 1, 0 }
  0x45   : > { %s174_s30 = sand.u32 1, %s785_s14   ;;  %p39_p9 = scmp.eq.s32.totalorder %s36_s28, 0 }
  0x46   : > { %s510_s29 = sshll.u32 %s174_s30, 3  ;;  %s529_s11 = sshll.u32 %s793_s16, 7 }
  0x47   : > { %s971_s18 = scalar_select %p39_p9, %s785_s14, %s41_s25  }
  0x48   : > { %s976_s6 = scalar_lea.hbm %s1086_s0, %s529_s11  ;;  %s178_s21 = scalar_lea.vmem [#allocation2], %s510_s29 }
  0x49   : > { %s188_s7 = sshll.u32 %s178_s21, 4  ;;  %p980_p2 = pnand %p562_p3, %p50_p5  ;;  %s984_s7 = int_to_ptr.vmem [resolvable:$true] %s188_s7 }
  0x4a   : > { %s175_s26 = scalar_lea.sflag [#allocation3], %s174_s30  ;;  %s681_s9 = scalar_lea.hbm %s976_s6, 128 }
  0x4b   : > { %p682_p11 = scmp.ne.s32.totalorder %s976_s6, %s681_s9  ;;  %p683_p12 = pneg %p980_p2 }
  0x4c   : > { %s686_s28 = scalar_lea.hbm %s1086_s0, 256  ;;  %p687_p4 = scmp.lt.u32.totalorder %s976_s6, %s1086_s0 }
  0x4d   : > { %p684_p0 = pnand %p683_p12, %p682_p11  ;;  %p688_p13 = scmp.lt.u32.totalorder %s686_s28, %s681_s9 }
  0x4e   : > { %p690_p10 = scmp.lt.u32.totalorder %s681_s9, %s976_s6 }
  0x4f   : > { %p685_p1 = pneg %p684_p0  ;;  %p689_p6 = por %p688_p13, %p687_p4 }
  0x51   : > { %p691_p3 = por %p690_p10, %p689_p6 }
  0x53   : > { %p692_p5 = pnand %p691_p3, %p685_p1 }
  0x55   : > { %695 = shalt.err (!%p692_p5)
}
  0x56   : > { %s696_s30 = scalar_lea.vmem %s984_s7, 128  ;;  %s803_s4 = smov [#allocation2]  }
  0x57   : > { %p697_p9 = scmp.ne.s32.totalorder %s984_s7, %s696_s30  ;;  %s701_s5 = sshll.u32 %s803_s4, 4  ;;  %s702_s5 = int_to_ptr.vmem [resolvable:$false] %s701_s5 }
  0x58   : > { %s703_s21 = scalar_lea.vmem %s702_s5, 256  ;;  %p704_p7 = scmp.lt.s32.totalorder %s984_s7, %s702_s5 }
  0x59   : > { %p699_p11 = pnand %p697_p9, %p683_p12  ;;  %p705_p4 = scmp.lt.s32.totalorder %s703_s21, %s696_s30 }
  0x5b   : > { %p700_p0 = pneg %p699_p11  ;;  %p706_p13 = por %p705_p4, %p704_p7 }
  0x5d   : > { %p707_p6 = pnand %p706_p13, %p700_p0 }
  0x5f   : > { %710 = shalt.err (!%p707_p6)
}
  0x60   : > { %555 = dma.hbm_to_vmem [thread:$0]  (!%p980_p2), %s976_s6, 128, %s984_s7, %s175_s26  }
  0x61   : > { %197 = sbr.rel (%p883_p8) target bundleno = 348 (0x15c), region = 32  ;;  %s1014_s9 = sand.u32 (!%p883_p8), 1, %s781_s13  }
  0x62   : > { %s514_s10 = sshll.u32 (!%p883_p8), %s1014_s9, 3  ;;  %s200_s25 = scalar_lea.sflag (!%p883_p8), [#allocation3], %s1014_s9 }
  0x63   : > { %s203_s28 = scalar_lea.vmem (!%p883_p8), [#allocation2], %s514_s10  ;;  %p1102_p7 = scmp.ne.s32.totalorder (!%p883_p8), %s1096_s22, 0 }
  0x68   : > { %764 = dma.done.wait (%p1102_p7), %s200_s25, 128  }
  0x69   : > { %766 = vsyncadd (%p1102_p7), %s200_s25, 4294967168  ;;  %p1103_p12 = scmp.ne.s32.totalorder %s1094_s20, 0 }
  0x6b   : > { %768 = dma.done.wait (%p1103_p12), [#allocation6], 1024  }
  0x6c   : > { %770 = vsyncadd (%p1103_p12), [#allocation6], 4294966272  ;;  %v804_v0 = vmov 0.0   ;;  %v805_v1 = vmov 0   ;;  %v240_v2 = vld [vmem:[%s203_s28] sm:$0xff]  ;;  %vm280_vm0 = vcmask 1043456  }
  0x6d   : > { %349 = vmatprep.mubr.f32.mxu0 %v804_v0  ;;  %361 = vmatprep.mubr.f32.mxu1 %v804_v0  ;;  %v266_v3 = vcombine.high %v240_v2, %v240_v2  ;;  %v243_v4 = vld [vmem:[#allocation7 + $0x10] sm:$0xff]  ;;  %v236_v5 = vld [vmem:[#allocation5] sm:$0xff]  ;;  %vm267_vm1 = vcmask 31744   ;;  %v244_v8 = vld [vmem:[#allocation7 + $0x18] sm:$0xff]  ;;  %s517_s20 = sshll.u32 %s1014_s9, 6  ;;  %s530_s6 = sshll.u32 %s789_s15, 10 }
  0x6e   : > { %623 = vset.pattern.permute.xlu1 %v805_v1  ;;  %622 = vset.pattern.permute.xlu0 %v805_v1  ;;  %v238_v6 = vld [vmem:[#allocation5 + $0x10] sm:$0xff]  ;;  %v241_v7 = vld [vmem:[#allocation7] sm:$0xff]  ;;  %v237_v9 = vld [vmem:[#allocation5 + $0x8] sm:$0xff]  ;;  %s233_s22 = scalar_lea.vmem [#allocation8], %s517_s20  ;;  %s1037_s8 = scalar_lea.hbm %s1089_s3, %s530_s6 }
  0x6f   : > { %257 = vperm.xlu1 %623, %v243_v4   ;;  %518 = vmatprep.subr.msk.mxu0 %vm280_vm0, %v266_v3  ;;  %v239_v10 = vld [vmem:[#allocation5 + $0x18] sm:$0xff]  ;;  %v242_v11 = vld [vmem:[#allocation7 + $0x8] sm:$0xff]  ;;  %s398_s24 = sshll.u32 %s233_s22, 4  ;;  %s383_s26 = scalar_lea.sflag [#allocation4], %s1014_s9  ;;  %s1032_s24 = int_to_ptr.vmem [resolvable:$true] %s398_s24 }
  0x70   : > { %531 = vmatprep.subr.msk.mxu1 %vm280_vm0, %v266_v3  ;;  %519 = vmatpush1.msk.msra.mxu0 %vm280_vm0, %v240_v2  ;;  %s711_s29 = scalar_lea.vmem %s1032_s24, 1024  ;;  %p1104_p2 = scmp.ne.s32.totalorder %s1100_s27, 0 }
  0x71   : > { %532 = vmatpush1.msk.msra.mxu1 %vm280_vm0, %v240_v2  ;;  %520 = vmatmul.mubr.msk.f32.vlgmr.msra.gmra.mrb[0].mxu0 %vm267_vm1, %v236_v5  ;;  %p712_p8 = scmp.ne.s32.totalorder %s1032_s24, %s711_s29  ;;  %s806_s11 = smov [#allocation8]  }
  0x72   : > { %522 = vmatmul.mubr.msk.f32.vlgmr.msra.gmra.mrb[0].mxu1 %vm267_vm1, %v238_v6  ;;  %355 = vmatprep.mubr.f32.mxu0 %v804_v0  ;;  %s715_s30 = sshll.u32 %s806_s11, 4  ;;  %s716_s30 = int_to_ptr.vmem [resolvable:$false] %s715_s30 }
  0x73   : > { %367 = vmatprep.mubr.f32.mxu1 %v804_v0  ;;  %247 = vperm.xlu0 %622, %v241_v7   ;;  %p713_p1 = pnand %p712_p8, %p1104_p2  ;;  %s717_s4 = scalar_lea.vmem %s716_s30, 2048 }
  0x74   : > { %262 = vperm.xlu1 %623, %v244_v8   ;;  %p718_p3 = scmp.lt.s32.totalorder %s1032_s24, %s716_s30  ;;  %p719_p5 = scmp.lt.s32.totalorder %s717_s4, %s711_s29 }
  0x75   : > { %521 = vmatmul.mubr.msk.f32.gmra.mrb[2].mxu0 %vm267_vm1, %v237_v9  ;;  %p714_p10 = pneg %p713_p1 }
  0x76   : > { %523 = vmatmul.mubr.msk.f32.gmra.mrb[2].mxu1 %vm267_vm1, %v239_v10  ;;  %p720_p9 = por %p719_p5, %p718_p3 }
  0x77   : > { %252 = vperm.xlu0 %622, %v242_v11  }
  0x78   : > { %p721_p11 = pnand %p720_p9, %p714_p10 }
  0xee   : > { %v258_v12 = vpop.permute.xlu1 %257 }
  0xf2   : > { %v248_v13 = vpop.permute.xlu0 %247 }
  0xf3   : > { %v263_v22 = vpop.permute.xlu1 %262 }
  0xf6   : > { %v253_v23 = vpop.permute.xlu0 %252 }
 0x144   : > { %v351_v14 = vpop.f32.mrb[0].mxu0 }
 0x145   : > { %v363_v15 = vpop.f32.mrb[0].mxu1  ;;  %v352_v16 = vadd.f32 %v351_v14, %v248_v13  ;;  %v353_v18 = vpop.f32.mrb[1].mxu0 }
 0x146   : > { %v364_v17 = vadd.f32 %v363_v15, %v258_v12  ;;  %v365_v19 = vpop.f32.mrb[1].mxu1  ;;  %v354_v20 = vadd.f32 %v353_v18, %v248_v13 }
 0x147   : > { %v366_v21 = vadd.f32 %v365_v19, %v258_v12  ;;  %374 = vst [vmem:[%s233_s22] sm:$0xff] %v352_v16 }
 0x148   : > { %378 = vst [vmem:[%s233_s22 + $0x20] sm:$0xff] %v364_v17  ;;  %375 = vst [vmem:[%s233_s22 + $0x8] sm:$0xff] %v354_v20  ;;  %v357_v24 = vpop.f32.mrb[2].mxu0 }
 0x149   : > { %379 = vst [vmem:[%s233_s22 + $0x28] sm:$0xff] %v366_v21  ;;  %v369_v25 = vpop.f32.mrb[2].mxu1  ;;  %v358_v26 = vadd.f32 %v357_v24, %v253_v23  ;;  %v359_v28 = vpop.f32.mrb[3].mxu0 }
 0x14a   : > { %v370_v27 = vadd.f32 %v369_v25, %v263_v22  ;;  %v371_v29 = vpop.f32.mrb[3].mxu1  ;;  %v360_v30 = vadd.f32 %v359_v28, %v253_v23 }
 0x14b   : > { %v372_v31 = vadd.f32 %v371_v29, %v263_v22  ;;  %376 = vst [vmem:[%s233_s22 + $0x10] sm:$0xff] %v358_v26 }
 0x14c   : > { %380 = vst [vmem:[%s233_s22 + $0x30] sm:$0xff] %v370_v27  ;;  %377 = vst [vmem:[%s233_s22 + $0x18] sm:$0xff] %v360_v30 }
 0x14d   : > { %381 = vst [vmem:[%s233_s22 + $0x38] sm:$0xff] %v372_v31 }
 0x14e   : > { %724 = shalt.err (!%p721_p11)
}
 0x14f   : > { %s725_s5 = scalar_lea.hbm %s1037_s8, 1024  ;;  %s729_s25 = scalar_lea.hbm %s1089_s3, 2048 }
 0x150   : > { %p726_p0 = scmp.ne.s32.totalorder %s1037_s8, %s725_s5  ;;  %p730_p6 = scmp.lt.u32.totalorder %s1037_s8, %s1089_s3 }
 0x151   : > { %p731_p7 = scmp.lt.u32.totalorder %s729_s25, %s725_s5  ;;  %p733_p8 = scmp.lt.u32.totalorder %s725_s5, %s1037_s8 }
 0x152   : > { %p727_p4 = pnand %p726_p0, %p1104_p2 }
 0x153   : > { %p732_p12 = por %p731_p7, %p730_p6 }
 0x154   : > { %p728_p13 = pneg %p727_p4 }
 0x155   : > { %p734_p1 = por %p733_p8, %p732_p12 }
 0x157   : > { %p735_p10 = pnand %p734_p1, %p728_p13 }
 0x159   : > { %738 = shalt.err (!%p735_p10)
}
 0x15a   : > { %s807_s22 = smov 256   ;;  %s808_s6 = smov 16  }
 0x15b   : > { %543 = dma.vmem_to_hbm [thread:$0]  (%p1104_p2), %s1032_s24, 1024, %s1037_s8, %s383_s26, %s807_s22, %s807_s22, %s808_s6  }
 0x15c PF: > { %s413_s7 = sand.u32 1, %s777_s12   ;;  %p1105_p3 = scmp.ne.s32.totalorder %s1097_s23, 0 }
 0x15d   : > { %p1106_p5 = scmp.ge.s32.totalorder %s797_s17, 2  ;;  %s414_s15 = scalar_lea.sflag [#allocation4], %s413_s7 }
 0x15f   : > { %p557_p9 = pnand %p1106_p5, %p1105_p3 }
 0x161   : > { %772 = dma.done.wait (!%p557_p9), %s414_s15, 1024  }
 0x162   : > { %774 = vsyncadd (!%p557_p9), %s414_s15, 4294966272  ;;  %s20_s17 = sadd.s32 1, %s797_s17   ;;  %s1107_s12 = smov %s781_s13 }
 0x163   : > { %p17_p11 = scmp.ge.s32.totalorder %s20_s17, 4   ;;  %s1108_s13 = smov %s785_s14 }
 0x164   : > { %s1109_s14 = smov %s971_s18  ;;  %s1110_s15 = smov %s793_s16 }
 0x165   : > { %s1111_s16 = smov %s1113_s19  ;;  %19 = sbr.rel (!%p17_p11) target bundleno = 7 (0x7), region = 85 }
 0x16c   :  { %419 = vsyncpa [#allocation3], 1 }
 0x16d   :  { %421 = vsyncpa [#allocation3 + $0x1], 1 }
 0x16e   :  { %422 = vsyncpa [#allocation6], 1 }
 0x16f   :  { %423 = vsyncpa [#allocation4], 1 }
 0x170   :  { %425 = vsyncpa [#allocation4 + $0x1], 1 }

</bundles_post_ra>
